<compile_context>
chip_gen: v7x
topology: tpu7x:2x2x1
jax: 0.10.0
libtpu: 0.0.40
codegen_flags: <defaults>
</compile_context>

<pallas_src>
import jax
import jax.numpy as jnp
from jax.experimental import pallas as pl
from jax.experimental.pallas import tpu as pltpu


def mlp_kernel(x_ref, w1_ref, b1_ref, w2_ref, b2_ref, out_ref):
    # ---- hidden layer: Linear (bf16 MXU operands, f32 accumulate) + Sigmoid ----
    x = x_ref[...].astype(jnp.bfloat16)            # cast on the VPU; x streams from HBM as f32 exactly once
    h = jnp.dot(x, w1_ref[...], preferred_element_type=jnp.float32)
    h = h + b1_ref[...]                            # (tb, NH) + (1, NH)
    h = 0.5 * jnp.tanh(0.5 * h) + 0.5              # exact sigmoid identity, single EUP op

    # ---- output layer: Linear + Softmax(axis=-1) ----
    logits = jnp.dot(h.astype(jnp.bfloat16), w2_ref[...],
                     preferred_element_type=jnp.float32)
    logits = logits + b2_ref[...]                  # (tb, NA) + (1, NA)
    m = jnp.max(logits, axis=-1, keepdims=True)
    e = jnp.exp(logits - m)
    denom = jnp.sum(e, axis=-1, keepdims=True)
    probs = e / denom                              # exact divide: rows sum to 1 at f32 precision

    # TODO(synk): reviewer's "batch-fold" lane-dense store ((tb,8)->(tb/16,128) so
    # every vst is unmasked) needs a sublane->lane relayout whose Mosaic shape-cast
    # lowering is not guaranteed for an 8-lane minor dim, and the padded-(tb,128)
    # slab fallback is a net loss here (16x HBM write amplification at NA=8).
    # Output stays (tb, NA): the writeback DMA is still contiguous (block spans the
    # full row) and output bytes are only NA/NI = 1/4 of the x stream. Revisit if a
    # guaranteed relayout path lands or NA grows.
    out_ref[...] = probs.astype(out_ref.dtype)


def _round_up(n: int, m: int) -> int:
    return ((n + m - 1) // m) * m


def prepare_params(w1, b1, w2, b2):
    """One-time layout/dtype prep, hoisted out of the per-call hot path.

    PyTorch nn.Linear stores weight as [out, in]; the kernel wants [in, out]
    bf16 MXU operands and f32 row-vector biases.
    """
    w1t = jnp.asarray(w1, jnp.float32).T.astype(jnp.bfloat16)   # (NI, NH)
    w2t = jnp.asarray(w2, jnp.float32).T.astype(jnp.bfloat16)   # (NH, NA)
    b1r = jnp.asarray(b1, jnp.float32).reshape(1, -1)           # (1, NH)
    b2r = jnp.asarray(b2, jnp.float32).reshape(1, -1)           # (1, NA)
    return w1t, b1r, w2t, b2r


def mlp_forward(x, w1t, b1r, w2t, b2r, *, batch_tile=8192, out_dtype=jnp.float32):
    """x: [B, NI] f32/bf16; w1t: [NI, NH] bf16; b1r: [1, NH] f32; w2t: [NH, NA] bf16; b2r: [1, NA] f32."""
    B, NI = x.shape
    NH = w1t.shape[1]
    NA = w2t.shape[1]

    # --- batch tiling (the only tiled axis) ---
    tb = min(batch_tile, B)
    if B >= 256:
        # Cap the tile at ~B/2 so the grid has >= 2 steps and the parallel batch
        # axis shards across both TensorCores on v7x (2 TC/chip). Skipped for
        # tiny B, where a single grid step's ~0.35us overhead matters more.
        tb = min(tb, _round_up(pl.cdiv(B, 2), 16))
    if tb < B:
        # Multiple of 16 (bf16 sublane pack granularity) when actually tiling;
        # when tb == B the block equals the full array, which is always legal.
        tb = min(_round_up(tb, 16), B)
    grid = (pl.cdiv(B, tb),)   # ragged tail handled by Pallas partial-block masking

    return pl.pallas_call(
        mlp_kernel,
        out_shape=jax.ShapeDtypeStruct((B, NA), out_dtype),
        grid_spec=pltpu.PrefetchScalarGridSpec(
            num_scalar_prefetch=0,
            grid=grid,
            in_specs=[
                pl.BlockSpec((tb, NI), lambda i: (i, 0)),   # x tile (only tiled input); f32 in, bf16 cast in-kernel
                pl.BlockSpec((NI, NH), lambda i: (0, 0)),   # W1^T bf16, grid-invariant / resident
                pl.BlockSpec((1, NH), lambda i: (0, 0)),    # b1
                pl.BlockSpec((NH, NA), lambda i: (0, 0)),   # W2^T bf16, grid-invariant / resident
                pl.BlockSpec((1, NA), lambda i: (0, 0)),    # b2
            ],
            out_specs=pl.BlockSpec((tb, NA), lambda i: (i, 0)),
        ),
        compiler_params=pltpu.CompilerParams(
            # Batch axis parallel -> megacore sharding on v7x (2 TCs/chip).
            dimension_semantics=("parallel",),
            # Generous cap (~4x worst-case usage at tb=8192). Note: this is not
            # what keeps the tiling safe on v7x's 64 MiB part -- actual per-tile
            # footprint is a few MB at most.
            vmem_limit_bytes=32 * 1024 * 1024,
        ),
    )(x, w1t, b1r, w2t, b2r)


if __name__ == "__main__":
    # Shapes consistent with the module's forward: MLP(num_input=32, num_hidden=64, num_actions=8).
    NI, NH, NA = 32, 64, 8

    key = jax.random.PRNGKey(0)
    kx, k1, k2, k3, k4, kx2 = jax.random.split(key, 6)

    # PyTorch Linear stores weight as [out, in].
    w1 = jax.random.normal(k1, (NH, NI), jnp.float32) * (1.0 / jnp.sqrt(NI))
    b1 = jax.random.normal(k2, (NH,), jnp.float32) * 0.01
    w2 = jax.random.normal(k3, (NA, NH), jnp.float32) * (1.0 / jnp.sqrt(NH))
    b2 = jax.random.normal(k4, (NA,), jnp.float32) * 0.01
    params = prepare_params(w1, b1, w2, b2)   # one-time transpose/cast (hoisted)

    def reference(xv):
        return jax.nn.softmax(jax.nn.sigmoid(xv @ w1.T + b1) @ w2.T + b2, axis=-1)

    def reference_bf16(xv):
        # Same operand rounding as the kernel's MXU inputs.
        xbf = xv.astype(jnp.bfloat16).astype(jnp.float32)
        w1b = w1.astype(jnp.bfloat16).astype(jnp.float32)
        w2b = w2.astype(jnp.bfloat16).astype(jnp.float32)
        hb = jax.nn.sigmoid(xbf @ w1b.T + b1)
        return jax.nn.softmax(hb.astype(jnp.bfloat16).astype(jnp.float32) @ w2b.T + b2, axis=-1)

    # Case 1: tiny batch (single grid step, block == full array).
    B1 = 16
    x1 = jax.random.normal(kx, (B1, NI), jnp.float32)
    out1 = jax.block_until_ready(mlp_forward(x1, *params))
    assert out1.shape == (B1, NA)
    assert jnp.allclose(jnp.sum(out1, axis=-1), 1.0, atol=1e-4)          # exact softmax normalization
    assert jnp.allclose(out1, reference_bf16(x1), atol=1e-2, rtol=1e-2)  # vs bf16-rounded reference
    assert jnp.allclose(out1, reference(x1), atol=5e-2, rtol=5e-2)       # vs full-f32 reference

    # Case 2: larger batch -> 2-step grid (both TensorCores on v7x), tile multiple of 16.
    B2 = 512
    x2 = jax.random.normal(kx2, (B2, NI), jnp.float32)
    out2 = jax.block_until_ready(mlp_forward(x2, *params))
    assert out2.shape == (B2, NA)
    assert jnp.allclose(jnp.sum(out2, axis=-1), 1.0, atol=1e-4)
    assert jnp.allclose(out2, reference_bf16(x2), atol=1e-2, rtol=1e-2)
    assert jnp.allclose(out2, reference(x2), atol=5e-2, rtol=5e-2)

    print("KERNEL_OK")
</pallas_src>

<mosaic_0001>
module attributes {stable_mosaic.version = 11 : i64} {
  func.func @mlp_kernel(%arg0: i32, %arg1: memref<16x32xf32, #tpu.memory_space<vmem>>, %arg2: memref<32x64xbf16, #tpu.memory_space<vmem>>, %arg3: memref<1x64xf32, #tpu.memory_space<vmem>>, %arg4: memref<64x8xbf16, #tpu.memory_space<vmem>>, %arg5: memref<1x8xf32, #tpu.memory_space<vmem>>, %arg6: memref<16x8xf32, #tpu.memory_space<vmem>>) attributes {dimension_semantics = [#tpu.dimension_semantics<parallel>], iteration_bounds = array<i64: 1>, scalar_prefetch = 0 : i64, scratch_operands = 0 : i64, tpu.core_type = #tpu.core_type<tc>, window_params = [{transform_indices = @transform_0, window_bounds = array<i64: 16, 32>}, {pipeline_mode = #tpu.pipeline_mode<synchronous>, transform_indices = @transform_1, window_bounds = array<i64: 32, 64>}, {pipeline_mode = #tpu.pipeline_mode<synchronous>, transform_indices = @transform_2, window_bounds = array<i64: 1, 64>}, {pipeline_mode = #tpu.pipeline_mode<synchronous>, transform_indices = @transform_3, window_bounds = array<i64: 64, 8>}, {pipeline_mode = #tpu.pipeline_mode<synchronous>, transform_indices = @transform_4, window_bounds = array<i64: 1, 8>}, {transform_indices = @transform_5, window_bounds = array<i64: 16, 8>}]} {
    %c0 = arith.constant 0 : index
    %c0_0 = arith.constant 0 : index
    %0 = vector.load %arg1[%c0, %c0_0] : memref<16x32xf32, #tpu.memory_space<vmem>>, vector<16x32xf32>
    %1 = arith.truncf %0 : vector<16x32xf32> to vector<16x32xbf16>
    %c0_1 = arith.constant 0 : index
    %c0_2 = arith.constant 0 : index
    %2 = vector.load %arg2[%c0_1, %c0_2] : memref<32x64xbf16, #tpu.memory_space<vmem>>, vector<32x64xbf16>
    %cst = arith.constant dense<0.000000e+00> : vector<16x64xf32>
    %3 = tpu.matmul %1, %2, %cst {dimension_numbers = #tpu.dot_dimension_numbers<[1], [0], [0], [1], [0, 0, 1, 1], [], []>} : vector<16x32xbf16>, vector<32x64xbf16>, vector<16x64xf32> -> vector<16x64xf32>
    %c0_3 = arith.constant 0 : index
    %c0_4 = arith.constant 0 : index
    %4 = vector.load %arg3[%c0_3, %c0_4] : memref<1x64xf32, #tpu.memory_space<vmem>>, vector<1x64xf32>
    %5 = vector.broadcast %4 : vector<1x64xf32> to vector<16x64xf32>
    %6 = arith.addf %3, %5 : vector<16x64xf32>
    %cst_5 = arith.constant 5.000000e-01 : f32
    %7 = vector.broadcast %cst_5 : f32 to vector<16x64xf32>
    %8 = arith.mulf %7, %6 : vector<16x64xf32>
    %9 = math.tanh %8 : vector<16x64xf32>
    %cst_6 = arith.constant 5.000000e-01 : f32
    %10 = vector.broadcast %cst_6 : f32 to vector<16x64xf32>
    %11 = arith.mulf %10, %9 : vector<16x64xf32>
    %cst_7 = arith.constant 5.000000e-01 : f32
    %12 = vector.broadcast %cst_7 : f32 to vector<16x64xf32>
    %13 = arith.addf %11, %12 : vector<16x64xf32>
    %14 = arith.truncf %13 : vector<16x64xf32> to vector<16x64xbf16>
    %c0_8 = arith.constant 0 : index
    %c0_9 = arith.constant 0 : index
    %15 = vector.load %arg4[%c0_8, %c0_9] : memref<64x8xbf16, #tpu.memory_space<vmem>>, vector<64x8xbf16>
    %cst_10 = arith.constant dense<0.000000e+00> : vector<16x8xf32>
    %16 = tpu.matmul %14, %15, %cst_10 {dimension_numbers = #tpu.dot_dimension_numbers<[1], [0], [0], [1], [0, 0, 1, 1], [], []>} : vector<16x64xbf16>, vector<64x8xbf16>, vector<16x8xf32> -> vector<16x8xf32>
    %c0_11 = arith.constant 0 : index
    %c0_12 = arith.constant 0 : index
    %17 = vector.load %arg5[%c0_11, %c0_12] : memref<1x8xf32, #tpu.memory_space<vmem>>, vector<1x8xf32>
    %18 = vector.broadcast %17 : vector<1x8xf32> to vector<16x8xf32>
    %19 = arith.addf %16, %18 : vector<16x8xf32>
    %cst_13 = arith.constant dense<0xFF800000> : vector<16xf32>
    %20 = vector.multi_reduction <maximumf>, %19, %cst_13 [1] : vector<16x8xf32> to vector<16xf32>
    %21 = vector.shape_cast %20 : vector<16xf32> to vector<16x1xf32>
    %22 = vector.broadcast %21 : vector<16x1xf32> to vector<16x8xf32>
    %23 = arith.subf %19, %22 : vector<16x8xf32>
    %24 = math.exp %23 : vector<16x8xf32>
    %cst_14 = arith.constant dense<0.000000e+00> : vector<16xf32>
    %25 = vector.multi_reduction <add>, %24, %cst_14 [1] : vector<16x8xf32> to vector<16xf32>
    %26 = vector.shape_cast %25 : vector<16xf32> to vector<16x1xf32>
    %27 = vector.broadcast %26 : vector<16x1xf32> to vector<16x8xf32>
    %28 = arith.divf %24, %27 : vector<16x8xf32>
    %c0_15 = arith.constant 0 : index
    %c0_16 = arith.constant 0 : index
    %29 = vector.load %arg6[%c0_15, %c0_16] : memref<16x8xf32, #tpu.memory_space<vmem>>, vector<16x8xf32>
    tpu.vector_store %arg6[%c0_15, %c0_16], %28 {strides = array<i32>} : memref<16x8xf32, #tpu.memory_space<vmem>>, vector<16x8xf32>,
    return
  }
  func.func @transform_0(%arg0: i32) -> (i32, i32) {
    %c0_i32 = arith.constant 0 : i32
    %c0_i32_0 = arith.constant 0 : i32
    return %arg0, %c0_i32 : i32, i32
  }
  func.func @transform_1(%arg0: i32) -> (i32, i32) {
    %c0_i32 = arith.constant 0 : i32
    %c0_i32_0 = arith.constant 0 : i32
    %c0_i32_1 = arith.constant 0 : i32
    return %c0_i32, %c0_i32_0 : i32, i32
  }
  func.func @transform_2(%arg0: i32) -> (i32, i32) {
    %c0_i32 = arith.constant 0 : i32
    %c0_i32_0 = arith.constant 0 : i32
    %c0_i32_1 = arith.constant 0 : i32
    return %c0_i32, %c0_i32_0 : i32, i32
  }
  func.func @transform_3(%arg0: i32) -> (i32, i32) {
    %c0_i32 = arith.constant 0 : i32
    %c0_i32_0 = arith.constant 0 : i32
    %c0_i32_1 = arith.constant 0 : i32
    return %c0_i32, %c0_i32_0 : i32, i32
  }
  func.func @transform_4(%arg0: i32) -> (i32, i32) {
    %c0_i32 = arith.constant 0 : i32
    %c0_i32_0 = arith.constant 0 : i32
    %c0_i32_1 = arith.constant 0 : i32
    return %c0_i32, %c0_i32_0 : i32, i32
  }
  func.func @transform_5(%arg0: i32) -> (i32, i32) {
    %c0_i32 = arith.constant 0 : i32
    %c0_i32_0 = arith.constant 0 : i32
    return %arg0, %c0_i32 : i32, i32
  }
}

</mosaic_0001>

<bundles_post_ra>
// kernel: tpu_custom_call.1
= control target key start
LH: loop header
LB: loop body
LE: loop exit
PB: predicated region body
PF: predicated region fallthrough
CT: control target
= control target key end

     0   :  { %v272_v0 = vmov 0.0   ;;  %vm273_vm0 = vmmov 0   ;;  %vm47_vm1 = vcmask 261120   ;;  %vm140_vm2 = vcmask 523264   ;;  %s346_s1 = inlined_call_operand.vmem [shape: bf16[32,64], index: 1, kind: input, shape index: {}]   ;;  %s347_s0 = inlined_call_operand.vmem [shape: f32[16,32], index: 0, kind: input, shape index: {}]   ;;  %s348_s3 = inlined_call_operand.vmem [shape: bf16[64,8], index: 3, kind: input, shape index: {}]   ;;  %s349_s2 = inlined_call_operand.vmem [shape: f32[1,64], index: 2, kind: input, shape index: {}]   ;;  %s350_s4 = inlined_call_operand.vmem [shape: f32[1,8], index: 4, kind: input, shape index: {}]   ;;  %s351_s5 = inlined_call_operand.vmem [shape: f32[16,8], index: 5, kind: output, shape index: {}]  }
   0x1   :  { %232 = vmatprep.subr.bf16.mxu0 %v272_v0  ;;  %v254_v1 = vld [vmem:[%s346_s1] sm:$0xff]   ;;  %236 = vmatprep.mubr.msk.bf16.mxu0 %vm273_vm0, %v272_v0  ;;  %v255_v2 = vld [vmem:[%s346_s1 + $0x8] sm:$0xff]   ;;  %v258_v8 = vld [vmem:[%s348_s3 + $0x10] sm:$0xff]   ;;  %vm185_vm3 = vcmask 64512  }
   0x2   :  { %240 = vmatprep.subr.bf16.mxu1 %v272_v0  ;;  %248 = vmatprep.mubr.msk.bf16.mxu1 %vm273_vm0, %v272_v0  ;;  %v21_v3 = vld [vmem:[%s347_s0] sm:$0xff]  ;;  %v22_v4 = vld [vmem:[%s347_s0 + $0x8] sm:$0xff]  ;;  %v259_v9 = vld [vmem:[%s348_s3 + $0x18] sm:$0xff]  }
   0x3   :  { %233 = vmatpush3.bf16.msra.mxu0 %v254_v1  ;;  %v23_v5 = vpack.c.bf16 %v22_v4, %v21_v3  ;;  %v256_v6 = vld [vmem:[%s348_s3] sm:$0xff]   ;;  %v257_v7 = vld [vmem:[%s348_s3 + $0x8] sm:$0xff]  }
   0x4   :  { %234 = vmatprep.subr.bf16.mxu0 %v272_v0  ;;  %241 = vmatpush3.bf16.msra.mxu1 %v256_v6  ;;  %v214_v10 = vld [vmem:[%s349_s2] ss:$0 sm:$0xff] }
   0x5   :  { %242 = vmatprep.subr.bf16.mxu1 %v272_v0  ;;  %v218_v26 = vld [vmem:[%s350_s4] ss:$0 sm:$0xff] }
   0x7   :  { %235 = vmatpush3.bf16.msra.mxu0 %v255_v2 }
   0x8   :  { %243 = vmatpush3.bf16.msra.mxu1 %v257_v7 }
   0x9   :  { %244 = vmatprep.subr.bf16.mxu1 %v272_v0 }
   0xa   :  { %237 = vmatmul.mubr.msk.bf16.vlgmr.msra.gmra.mrb[0].mxu0 %vm47_vm1, %v23_v5 }
   0xc   :  { %245 = vmatpush3.bf16.msra.mxu1 %v258_v8 }
   0xd   :  { %246 = vmatprep.subr.bf16.mxu1 %v272_v0 }
  0x10   :  { %247 = vmatpush3.bf16.msra.mxu1 %v259_v9 }
  0xdd   :  { %v85_v11 = vpop.f32.mrb[0].mxu0 }
  0xde   :  { %v86_v12 = vadd.f32 %v214_v10, %v85_v11  ;;  %v238_v13 = vpop.f32.mrb[1].mxu0 }
  0xdf   :  { %v88_v14 = vpop.f32.mrb[2].mxu0 }
  0xe0   :  { %v92_v15 = vmul.f32 0.5, %v86_v12  ;;  %v89_v16 = vadd.f32 %v214_v10, %v88_v14  ;;  %v239_v17 = vpop.f32.mrb[3].mxu0 }
  0xe2   :  { %260 = vtanh.f32 %v92_v15  ;;  %v93_v18 = vmul.f32 0.5, %v89_v16 }
  0xe4   :  { %262 = vtanh.f32 %v93_v18 }
  0xec   :  { %v261_v19 = vpop.eup %260 }
  0xed   :  { %v96_v20 = vmul.f32 0.5, %v261_v19 }
  0xee   :  { %v263_v21 = vpop.eup %262 }
  0xef   :  { %v97_v22 = vmul.f32 0.5, %v263_v21  ;;  %v98_v23 = vadd.f32 0.5, %v96_v20 }
  0xf1   :  { %v99_v24 = vadd.f32 0.5, %v97_v22 }
  0xf3   :  { %v100_v25 = vpack.c.bf16 %v99_v24, %v98_v23 }
  0xf5   :  { %249 = vmatmul.mubr.msk.bf16.vlgmr.msra.gmra.mrb[0].mxu1 %vm140_vm2, %v100_v25 }
 0x1c8   :  { %v178_v27 = vpop.f32.mrb[0].mxu1 }
 0x1c9   :  { %v179_v28 = vadd.f32 %v218_v26, %v178_v27  ;;  %v250_v29 = vpop.f32.mrb[1].mxu1 }
 0x1ca   :  { %v181_v30 = vpop.f32.mrb[2].mxu1 }
 0x1cb   :  { %v182_v31 = vadd.f32 %v218_v26, %v181_v30  ;;  %v251_v32 = vpop.f32.mrb[3].mxu1  ;;  %v186_v33 = vsel %vm185_vm3, %v179_v28, -inf }
 0x1cc   :  { %187 = vmax.xlane.f32.xlu0 %v186_v33 }
 0x1cd   :  { %v189_v34 = vsel %vm185_vm3, %v182_v31, -inf }
 0x1d0   :  { %190 = vmax.xlane.f32.xlu0 %v189_v34 }
 0x259   :  { %v188_v35 = vpop.xlane.xlu0 %187 }
 0x25a   :  { %v192_v36 = vsub.f32 %v179_v28, %v188_v35 }
 0x25c   :  { %v194_v37 = vmul.f32 1.442695, %v192_v36 }
 0x25d   :  { %v191_v38 = vpop.xlane.xlu0 %190 }
 0x25e   :  { %264 = vpow2.f32 %v194_v37  ;;  %v193_v39 = vsub.f32 %v182_v31, %v191_v38 }
 0x260   :  { %v196_v40 = vmul.f32 1.442695, %v193_v39 }
 0x262   :  { %266 = vpow2.f32 %v196_v40 }
 0x268   :  { %v265_v41 = vpop.eup %264 }
 0x269   :  { %v198_v42 = vsel %vm185_vm3, %v265_v41, 0.0 }
 0x26a   :  { %199 = vadd.xlane.f32.xlu1 %v198_v42 }
 0x26c   :  { %v267_v43 = vpop.eup %266 }
 0x26d   :  { %v201_v44 = vsel %vm185_vm3, %v267_v43, 0.0 }
 0x26e   :  { %202 = vadd.xlane.f32.xlu1 %v201_v44 }
 0x2f7   :  { %v200_v45 = vpop.xlane.xlu1 %199 }
 0x2f8   :  { %268 = vrcp.f32 %v200_v45 }
 0x2fb   :  { %v203_v46 = vpop.xlane.xlu1 %202 }
 0x2fc   :  { %270 = vrcp.f32 %v203_v46 }
 0x302   :  { %v269_v47 = vpop.eup %268 }
 0x303   :  { %v205_v48 = vmul.f32 %v269_v47, %v265_v41 }
 0x305   :  { %208 = vst.msk [vmem:[%s351_s5] sm:$0xff] %vm185_vm3, %v205_v48 }
 0x306   :  { %v271_v49 = vpop.eup %270 }
 0x307   :  { %v207_v50 = vmul.f32 %v271_v49, %v267_v43 }
 0x309   :  { %209 = vst.msk [vmem:[%s351_s5 + $0x8] sm:$0xff] %vm185_vm3, %v207_v50 }

</bundles_post_ra>
